<compile_context>
chip_gen: v5e
topology: v5e:2x2
jax: 0.10.0
libtpu: 0.0.40
codegen_flags: <defaults>
</compile_context>

<pallas_src>
import functools

import jax
import jax.numpy as jnp
from jax import lax
from jax.experimental import pallas as pl
from jax.experimental.pallas import tpu as pltpu


def _round_up(x: int, m: int) -> int:
    return ((x + m - 1) // m) * m


def _vmem_cap_bytes() -> int:
    """Physical VMEM minus headroom; conservative 64 MiB if the query fails."""
    try:
        cap = int(pltpu.get_tpu_info().vmem_capacity_bytes)
    except Exception:
        cap = 64 << 20  # v7x per-TensorCore VMEM (smallest of all generations)
    return max(cap - (16 << 20), 32 << 20)


def _block_spec(block_shape, index_map, single_buffer: bool):
    """BlockSpec for a constant-index (resident) block.

    With pipeline_mode=pl.Buffered(1) the block is single-buffered in VMEM
    (it is never re-fetched, so double-buffering only wastes VMEM).
    """
    if single_buffer:
        try:
            return pl.BlockSpec(block_shape, index_map,
                                pipeline_mode=pl.Buffered(1))
        except TypeError:  # older JAX without pipeline_mode support
            pass
    return pl.BlockSpec(block_shape, index_map)


# ----------------------------------------------------------------------------
# Kernels
# ----------------------------------------------------------------------------
def _resident_mlp_kernel(x_ref, w_in_ref, b_in_ref, w_hid_ref, b_hid_ref,
                         w_out_ref, b_out_ref, o_ref, hbuf,
                         *, num_hidden: int, unroll_hidden: bool):
    """Whole MLP for one batch tile; all weights VMEM-resident.

    x_ref   : (tm, F_in)            bf16
    w_in_ref: (F_in, F_h)  bf16     b_in_ref : (1, F_h)      f32
    w_hid   : (L_hid,F_h,F_h) bf16  b_hid    : (L_hid,1,F_h) f32
    w_out   : (F_h, F_out) bf16     b_out    : (1, F_out)    f32
    o_ref   : (tm, F_out)  f32
    hbuf    : (2, tm, F_h) bf16     ping-pong activation scratch
    """
    # First layer: x @ W_in + b, ReLU (f32 epilogue, bf16 for the next MXU pass).
    acc = jnp.dot(x_ref[...], w_in_ref[...],
                  preferred_element_type=jnp.float32) + b_in_ref[...]
    hbuf[0] = jnp.maximum(acc, 0.0).astype(hbuf.dtype)

    # Hidden square layers ping-pong between hbuf[0] / hbuf[1].
    if num_hidden > 0:
        if unroll_hidden:
            for l in range(num_hidden):
                src, dst = l % 2, (l + 1) % 2
                acc = jnp.dot(hbuf[src], w_hid_ref[l],
                              preferred_element_type=jnp.float32) + b_hid_ref[l]
                hbuf[dst] = jnp.maximum(acc, 0.0).astype(hbuf.dtype)
        else:
            def body(l, carry):
                src = lax.rem(l, 2)
                acc = jnp.dot(hbuf[src], w_hid_ref[l],
                              preferred_element_type=jnp.float32) + b_hid_ref[l]
                hbuf[1 - src] = jnp.maximum(acc, 0.0).astype(hbuf.dtype)
                return carry
            lax.fori_loop(0, num_hidden, body, 0)

    final_slot = num_hidden % 2
    out = jnp.dot(hbuf[final_slot], w_out_ref[...],
                  preferred_element_type=jnp.float32) + b_out_ref[...]
    o_ref[...] = out.astype(o_ref.dtype)


def _streaming_mlp_kernel(x_ref, w_in_ref, b_in_ref, w_hid_ref, b_hid_ref,
                          w_out_ref, b_out_ref, o_ref, hbuf,
                          *, num_hidden: int):
    """Layer-streaming variant: grid = (batch_tiles, num_hidden).

    Only one (F_h, F_h) hidden weight block (double-buffered by Pallas) is in
    VMEM at a time; activations persist in `hbuf` scratch across layer steps.
    Used when the fully-resident weight slab would not fit VMEM (e.g. v7x).
    """
    l = pl.program_id(1)

    @pl.when(l == 0)
    def _():
        acc = jnp.dot(x_ref[...], w_in_ref[...],
                      preferred_element_type=jnp.float32) + b_in_ref[...]
        hbuf[0] = jnp.maximum(acc, 0.0).astype(hbuf.dtype)

    src = lax.rem(l, 2)
    acc = jnp.dot(hbuf[src], w_hid_ref[0],
                  preferred_element_type=jnp.float32) + b_hid_ref[0]
    hbuf[1 - src] = jnp.maximum(acc, 0.0).astype(hbuf.dtype)

    @pl.when(l == num_hidden - 1)
    def _():
        out = jnp.dot(hbuf[1 - src], w_out_ref[...],
                      preferred_element_type=jnp.float32) + b_out_ref[...]
        o_ref[...] = out.astype(o_ref.dtype)


# ----------------------------------------------------------------------------
# Host-side packing (one-time) and forward wrapper
# ----------------------------------------------------------------------------
def prepare_params(params):
    """One-time packing of [(w:(in,out) f32, b:(1,out) f32), ...] into padded
    bf16/f32 slabs. Zero padding keeps padded lanes exactly zero through every
    Linear+ReLU, so no masking is needed inside the kernel."""
    num_layers = len(params)
    assert num_layers >= 2, "DeepMLP has at least first + final Linear"
    input_size = params[0][0].shape[0]
    hidden_size = params[0][0].shape[1]
    output_size = params[-1][0].shape[1]
    num_hidden = num_layers - 2            # depth - 1 square hidden layers

    F_in = _round_up(input_size, 128)
    F_h = _round_up(hidden_size, 128)
    F_out = _round_up(output_size, 128)

    def pad2(a, rows, cols, dtype):
        a = jnp.asarray(a, dtype)
        return jnp.pad(a, ((0, rows - a.shape[0]), (0, cols - a.shape[1])))

    w_in = pad2(params[0][0], F_in, F_h, jnp.bfloat16)
    b_in = pad2(params[0][1].reshape(1, -1), 1, F_h, jnp.float32)
    w_out = pad2(params[-1][0], F_h, F_out, jnp.bfloat16)
    b_out = pad2(params[-1][1].reshape(1, -1), 1, F_out, jnp.float32)

    if num_hidden > 0:
        w_hid = jnp.stack([pad2(w, F_h, F_h, jnp.bfloat16)
                           for (w, _) in params[1:-1]])
        b_hid = jnp.stack([pad2(b.reshape(1, -1), 1, F_h, jnp.float32)
                           for (_, b) in params[1:-1]])
    else:
        # Tiny placeholders — never read when num_hidden == 0.
        w_hid = jnp.zeros((1, 8, 128), jnp.bfloat16)
        b_hid = jnp.zeros((1, 1, 128), jnp.float32)

    meta = dict(input_size=input_size, hidden_size=hidden_size,
                output_size=output_size, num_hidden=num_hidden,
                F_in=F_in, F_h=F_h, F_out=F_out)
    return dict(w_in=w_in, b_in=b_in, w_hid=w_hid, b_hid=b_hid,
                w_out=w_out, b_out=b_out, meta=meta)


def deep_mlp_forward(x, packed):
    """x: (batch, input_size) f32; packed: output of prepare_params()."""
    meta = packed["meta"]
    F_in, F_h, F_out = meta["F_in"], meta["F_h"], meta["F_out"]
    num_hidden = meta["num_hidden"]
    input_size, output_size = meta["input_size"], meta["output_size"]

    batch = x.shape[0]

    # ---- batch tiling -------------------------------------------------------
    # Multiple of 16 sublanes (bf16), 256-row tiles for big batches (256-wide
    # MXUs on v6e/v7x), and >=2 tiles when possible so v7x's second TensorCore
    # gets work via the "parallel" grid axis.
    if batch >= 512:
        tm = 256
    elif batch >= 128:
        tm = 128
    else:
        tm = _round_up(max(batch, 1), 16)
    n_tiles = pl.cdiv(batch, tm)
    if n_tiles < 2 and batch >= 64:
        tm = _round_up(-(-batch // 2), 16)
        n_tiles = pl.cdiv(batch, tm)
    b_pad = n_tiles * tm

    # Pad/cast only the activation tile here (cheap, fused by XLA); weights were
    # packed once in prepare_params().
    x_p = jnp.pad(x.astype(jnp.bfloat16),
                  ((0, b_pad - batch), (0, F_in - input_size)))

    # ---- VMEM accounting & path selection -----------------------------------
    w_in_b = F_in * F_h * 2 + F_h * 4
    w_out_b = F_h * F_out * 2 + F_out * 4
    w_hid_res_b = int(packed["w_hid"].size) * 2 + int(packed["b_hid"].size) * 4
    w_hid_stream_b = 2 * (F_h * F_h * 2 + F_h * 4)        # double-buffered block
    io_b = 2 * tm * F_in * 2 + 2 * tm * F_out * 4          # double-buffered tiles
    scratch_b = 2 * tm * F_h * 2 + tm * F_h * 4            # ping-pong + f32 temps

    cap = _vmem_cap_bytes()
    resident_need = io_b + w_in_b + w_out_b + w_hid_res_b + scratch_b
    use_streaming = (num_hidden >= 1) and ((resident_need * 5) // 4 > cap)
    need = (io_b + w_in_b + w_out_b + w_hid_stream_b + scratch_b
            if use_streaming else resident_need)
    # Budget headroom (also covers a double-buffered fallback on old JAX).
    worst = need + (0 if use_streaming else (w_in_b + w_out_b + w_hid_res_b))
    vmem_limit = int(min(cap, max(worst * 3 // 2, 32 << 20)))

    wh_shape = tuple(packed["w_hid"].shape)
    bh_shape = tuple(packed["b_hid"].shape)

    if use_streaming:
        kernel = functools.partial(_streaming_mlp_kernel, num_hidden=num_hidden)
        grid = (n_tiles, num_hidden)
        dim_sem = ("parallel", "arbitrary")

        def make_specs(single_buffer):
            const = lambda shp, im: _block_spec(shp, im, single_buffer)
            in_specs = [
                pl.BlockSpec((tm, F_in), lambda i, l: (i, 0)),        # x tile
                const((F_in, F_h), lambda i, l: (0, 0)),              # w_in
                const((1, F_h), lambda i, l: (0, 0)),                 # b_in
                pl.BlockSpec((1, F_h, F_h), lambda i, l: (l, 0, 0)),  # streamed w
                pl.BlockSpec((1, 1, F_h), lambda i, l: (l, 0, 0)),    # streamed b
                const((F_h, F_out), lambda i, l: (0, 0)),             # w_out
                const((1, F_out), lambda i, l: (0, 0)),               # b_out
            ]
            out_spec = pl.BlockSpec((tm, F_out), lambda i, l: (i, 0))
            return in_specs, out_spec
    else:
        kernel = functools.partial(_resident_mlp_kernel, num_hidden=num_hidden,
                                   unroll_hidden=num_hidden <= 16)
        grid = (n_tiles,)
        dim_sem = ("parallel",)

        def make_specs(single_buffer):
            const = lambda shp, im: _block_spec(shp, im, single_buffer)
            in_specs = [
                pl.BlockSpec((tm, F_in), lambda i: (i, 0)),   # x tile
                const((F_in, F_h), lambda i: (0, 0)),         # w_in   (resident)
                const((1, F_h), lambda i: (0, 0)),            # b_in   (resident)
                const(wh_shape, lambda i: (0, 0, 0)),         # w_hid  (resident)
                const(bh_shape, lambda i: (0, 0, 0)),         # b_hid  (resident)
                const((F_h, F_out), lambda i: (0, 0)),        # w_out  (resident)
                const((1, F_out), lambda i: (0, 0)),          # b_out  (resident)
            ]
            out_spec = pl.BlockSpec((tm, F_out), lambda i: (i, 0))
            return in_specs, out_spec

    def _run(single_buffer):
        in_specs, out_spec = make_specs(single_buffer)
        return pl.pallas_call(
            kernel,
            out_shape=jax.ShapeDtypeStruct((b_pad, F_out), jnp.float32),
            grid=grid,
            in_specs=in_specs,
            out_specs=out_spec,
            scratch_shapes=[pltpu.VMEM((2, tm, F_h), jnp.bfloat16)],
            compiler_params=pltpu.CompilerParams(
                dimension_semantics=dim_sem,
                vmem_limit_bytes=vmem_limit,
            ),
        )(x_p, packed["w_in"], packed["b_in"], packed["w_hid"],
          packed["b_hid"], packed["w_out"], packed["b_out"])

    try:
        out_padded = _run(True)        # single-buffered resident weights
    except Exception:
        out_padded = _run(False)       # fallback: default double-buffering

    return out_padded[:batch, :output_size]


# ----------------------------------------------------------------------------
# Init + pure-JAX reference (same bf16-input / f32-accumulate semantics)
# ----------------------------------------------------------------------------
def init_deep_mlp_params(key, input_size, hidden_size, output_size, depth):
    """nn.Linear-style init; weights stored as (in, out) so kernel does x @ W + b.
    Layer count = depth + 1, matching the nn.Sequential in the reference module."""
    dims = [input_size] + [hidden_size] * depth + [output_size]
    params = []
    for i in range(len(dims) - 1):
        fan_in, fan_out = dims[i], dims[i + 1]
        key, kw, kb = jax.random.split(key, 3)
        bound = 1.0 / (fan_in ** 0.5)
        w = jax.random.uniform(kw, (fan_in, fan_out), jnp.float32, -bound, bound)
        b = jax.random.uniform(kb, (1, fan_out), jnp.float32, -bound, bound)
        params.append((w, b))
    return params


def deep_mlp_reference_bf16(x, params):
    h = x.astype(jnp.bfloat16)
    n = len(params)
    for idx, (w, b) in enumerate(params):
        acc = jnp.dot(h, w.astype(jnp.bfloat16),
                      preferred_element_type=jnp.float32) + b.astype(jnp.float32)
        if idx != n - 1:
            h = jnp.maximum(acc, 0.0).astype(jnp.bfloat16)
        else:
            h = acc
    return h


if __name__ == "__main__":
    batch = 2
    input_size = 16
    hidden_size = 32
    output_size = 8
    depth = 3  # -> 4 Linear layers: first + 2 hidden + final

    key = jax.random.PRNGKey(0)
    key, kx = jax.random.split(key)
    x = jax.random.normal(kx, (batch, input_size), jnp.float32)

    params = init_deep_mlp_params(key, input_size, hidden_size, output_size, depth)
    packed = prepare_params(params)          # one-time weight packing

    out = deep_mlp_forward(x, packed)
    out = jax.block_until_ready(out)

    ref = deep_mlp_reference_bf16(x, params)
    assert out.shape == (batch, output_size)
    max_err = float(jnp.max(jnp.abs(out - ref)))
    assert jnp.allclose(out, ref, atol=5e-3, rtol=5e-3), (
        f"mismatch vs bf16 reference (max abs err = {max_err})"
    )

    print("KERNEL_OK")
</pallas_src>

<mosaic_0001>
module attributes {stable_mosaic.version = 11 : i64} {
  func.func @_resident_mlp_kernel(%arg0: i32, %arg1: memref<16x128xbf16, #tpu.memory_space<vmem>>, %arg2: memref<128x128xbf16, #tpu.memory_space<vmem>>, %arg3: memref<1x128xf32, #tpu.memory_space<vmem>>, %arg4: memref<2x128x128xbf16, #tpu.memory_space<vmem>>, %arg5: memref<2x1x128xf32, #tpu.memory_space<vmem>>, %arg6: memref<128x128xbf16, #tpu.memory_space<vmem>>, %arg7: memref<1x128xf32, #tpu.memory_space<vmem>>, %arg8: memref<16x128xf32, #tpu.memory_space<vmem>>, %arg9: memref<2x16x128xbf16, #tpu.memory_space<vmem>>) attributes {dimension_semantics = [#tpu.dimension_semantics<parallel>], iteration_bounds = array<i64: 1>, scalar_prefetch = 0 : i64, scratch_operands = 1 : i64, tpu.core_type = #tpu.core_type<tc>, window_params = [{transform_indices = @transform_0, window_bounds = array<i64: 16, 128>}, {pipeline_mode = #tpu.pipeline_mode<synchronous>, transform_indices = @transform_1, window_bounds = array<i64: 128, 128>}, {pipeline_mode = #tpu.pipeline_mode<synchronous>, transform_indices = @transform_2, window_bounds = array<i64: 1, 128>}, {pipeline_mode = #tpu.pipeline_mode<synchronous>, transform_indices = @transform_3, window_bounds = array<i64: 2, 128, 128>}, {pipeline_mode = #tpu.pipeline_mode<synchronous>, transform_indices = @transform_4, window_bounds = array<i64: 2, 1, 128>}, {pipeline_mode = #tpu.pipeline_mode<synchronous>, transform_indices = @transform_5, window_bounds = array<i64: 128, 128>}, {pipeline_mode = #tpu.pipeline_mode<synchronous>, transform_indices = @transform_6, window_bounds = array<i64: 1, 128>}, {transform_indices = @transform_7, window_bounds = array<i64: 16, 128>}]} {
    %c0 = arith.constant 0 : index
    %c0_0 = arith.constant 0 : index
    %0 = vector.load %arg1[%c0, %c0_0] : memref<16x128xbf16, #tpu.memory_space<vmem>>, vector<16x128xbf16>
    %c0_1 = arith.constant 0 : index
    %c0_2 = arith.constant 0 : index
    %1 = vector.load %arg2[%c0_1, %c0_2] : memref<128x128xbf16, #tpu.memory_space<vmem>>, vector<128x128xbf16>
    %cst = arith.constant dense<0.000000e+00> : vector<16x128xf32>
    %2 = tpu.matmul %0, %1, %cst {dimension_numbers = #tpu.dot_dimension_numbers<[1], [0], [0], [1], [0, 0, 1, 1], [], []>} : vector<16x128xbf16>, vector<128x128xbf16>, vector<16x128xf32> -> vector<16x128xf32>
    %c0_3 = arith.constant 0 : index
    %c0_4 = arith.constant 0 : index
    %3 = vector.load %arg3[%c0_3, %c0_4] : memref<1x128xf32, #tpu.memory_space<vmem>>, vector<1x128xf32>
    %4 = vector.broadcast %3 : vector<1x128xf32> to vector<16x128xf32>
    %5 = arith.addf %2, %4 : vector<16x128xf32>
    %cst_5 = arith.constant 0.000000e+00 : f32
    %6 = vector.broadcast %cst_5 : f32 to vector<16x128xf32>
    %7 = arith.maximumf %5, %6 : vector<16x128xf32>
    %8 = arith.truncf %7 : vector<16x128xf32> to vector<16x128xbf16>
    %c0_6 = arith.constant 0 : index
    %c0_7 = arith.constant 0 : index
    %c0_8 = arith.constant 0 : index
    %9 = vector.load %arg9[%c0_6, %c0_7, %c0_8] : memref<2x16x128xbf16, #tpu.memory_space<vmem>>, vector<1x16x128xbf16>
    %10 = vector.shape_cast %9 : vector<1x16x128xbf16> to vector<16x128xbf16>
    %11 = vector.shape_cast %8 : vector<16x128xbf16> to vector<1x16x128xbf16>
    tpu.vector_store %arg9[%c0_6, %c0_7, %c0_8], %11 {strides = array<i32>} : memref<2x16x128xbf16, #tpu.memory_space<vmem>>, vector<1x16x128xbf16>,
    %c0_9 = arith.constant 0 : index
    %c0_10 = arith.constant 0 : index
    %c0_11 = arith.constant 0 : index
    %12 = vector.load %arg9[%c0_9, %c0_10, %c0_11] : memref<2x16x128xbf16, #tpu.memory_space<vmem>>, vector<1x16x128xbf16>
    %13 = vector.shape_cast %12 : vector<1x16x128xbf16> to vector<16x128xbf16>
    %c0_12 = arith.constant 0 : index
    %c0_13 = arith.constant 0 : index
    %c0_14 = arith.constant 0 : index
    %14 = vector.load %arg4[%c0_12, %c0_13, %c0_14] : memref<2x128x128xbf16, #tpu.memory_space<vmem>>, vector<1x128x128xbf16>
    %15 = vector.shape_cast %14 : vector<1x128x128xbf16> to vector<128x128xbf16>
    %cst_15 = arith.constant dense<0.000000e+00> : vector<16x128xf32>
    %16 = tpu.matmul %13, %15, %cst_15 {dimension_numbers = #tpu.dot_dimension_numbers<[1], [0], [0], [1], [0, 0, 1, 1], [], []>} : vector<16x128xbf16>, vector<128x128xbf16>, vector<16x128xf32> -> vector<16x128xf32>
    %c0_16 = arith.constant 0 : index
    %c0_17 = arith.constant 0 : index
    %c0_18 = arith.constant 0 : index
    %17 = vector.load %arg5[%c0_16, %c0_17, %c0_18] : memref<2x1x128xf32, #tpu.memory_space<vmem>>, vector<1x1x128xf32>
    %18 = vector.shape_cast %17 : vector<1x1x128xf32> to vector<1x128xf32>
    %19 = vector.broadcast %18 : vector<1x128xf32> to vector<16x128xf32>
    %20 = arith.addf %16, %19 : vector<16x128xf32>
    %cst_19 = arith.constant 0.000000e+00 : f32
    %21 = vector.broadcast %cst_19 : f32 to vector<16x128xf32>
    %22 = arith.maximumf %20, %21 : vector<16x128xf32>
    %23 = arith.truncf %22 : vector<16x128xf32> to vector<16x128xbf16>
    %c1 = arith.constant 1 : index
    %c0_20 = arith.constant 0 : index
    %c0_21 = arith.constant 0 : index
    %24 = vector.load %arg9[%c1, %c0_20, %c0_21] : memref<2x16x128xbf16, #tpu.memory_space<vmem>>, vector<1x16x128xbf16>
    %25 = vector.shape_cast %24 : vector<1x16x128xbf16> to vector<16x128xbf16>
    %26 = vector.shape_cast %23 : vector<16x128xbf16> to vector<1x16x128xbf16>
    tpu.vector_store %arg9[%c1, %c0_20, %c0_21], %26 {strides = array<i32>} : memref<2x16x128xbf16, #tpu.memory_space<vmem>>, vector<1x16x128xbf16>,
    %c1_22 = arith.constant 1 : index
    %c0_23 = arith.constant 0 : index
    %c0_24 = arith.constant 0 : index
    %27 = vector.load %arg9[%c1_22, %c0_23, %c0_24] : memref<2x16x128xbf16, #tpu.memory_space<vmem>>, vector<1x16x128xbf16>
    %28 = vector.shape_cast %27 : vector<1x16x128xbf16> to vector<16x128xbf16>
    %c1_25 = arith.constant 1 : index
    %c0_26 = arith.constant 0 : index
    %c0_27 = arith.constant 0 : index
    %29 = vector.load %arg4[%c1_25, %c0_26, %c0_27] : memref<2x128x128xbf16, #tpu.memory_space<vmem>>, vector<1x128x128xbf16>
    %30 = vector.shape_cast %29 : vector<1x128x128xbf16> to vector<128x128xbf16>
    %cst_28 = arith.constant dense<0.000000e+00> : vector<16x128xf32>
    %31 = tpu.matmul %28, %30, %cst_28 {dimension_numbers = #tpu.dot_dimension_numbers<[1], [0], [0], [1], [0, 0, 1, 1], [], []>} : vector<16x128xbf16>, vector<128x128xbf16>, vector<16x128xf32> -> vector<16x128xf32>
    %c1_29 = arith.constant 1 : index
    %c0_30 = arith.constant 0 : index
    %c0_31 = arith.constant 0 : index
    %32 = vector.load %arg5[%c1_29, %c0_30, %c0_31] : memref<2x1x128xf32, #tpu.memory_space<vmem>>, vector<1x1x128xf32>
    %33 = vector.shape_cast %32 : vector<1x1x128xf32> to vector<1x128xf32>
    %34 = vector.broadcast %33 : vector<1x128xf32> to vector<16x128xf32>
    %35 = arith.addf %31, %34 : vector<16x128xf32>
    %cst_32 = arith.constant 0.000000e+00 : f32
    %36 = vector.broadcast %cst_32 : f32 to vector<16x128xf32>
    %37 = arith.maximumf %35, %36 : vector<16x128xf32>
    %38 = arith.truncf %37 : vector<16x128xf32> to vector<16x128xbf16>
    %c0_33 = arith.constant 0 : index
    %c0_34 = arith.constant 0 : index
    %c0_35 = arith.constant 0 : index
    %39 = vector.load %arg9[%c0_33, %c0_34, %c0_35] : memref<2x16x128xbf16, #tpu.memory_space<vmem>>, vector<1x16x128xbf16>
    %40 = vector.shape_cast %39 : vector<1x16x128xbf16> to vector<16x128xbf16>
    %41 = vector.shape_cast %38 : vector<16x128xbf16> to vector<1x16x128xbf16>
    tpu.vector_store %arg9[%c0_33, %c0_34, %c0_35], %41 {strides = array<i32>} : memref<2x16x128xbf16, #tpu.memory_space<vmem>>, vector<1x16x128xbf16>,
    %c0_36 = arith.constant 0 : index
    %c0_37 = arith.constant 0 : index
    %c0_38 = arith.constant 0 : index
    %42 = vector.load %arg9[%c0_36, %c0_37, %c0_38] : memref<2x16x128xbf16, #tpu.memory_space<vmem>>, vector<1x16x128xbf16>
    %43 = vector.shape_cast %42 : vector<1x16x128xbf16> to vector<16x128xbf16>
    %c0_39 = arith.constant 0 : index
    %c0_40 = arith.constant 0 : index
    %44 = vector.load %arg6[%c0_39, %c0_40] : memref<128x128xbf16, #tpu.memory_space<vmem>>, vector<128x128xbf16>
    %cst_41 = arith.constant dense<0.000000e+00> : vector<16x128xf32>
    %45 = tpu.matmul %43, %44, %cst_41 {dimension_numbers = #tpu.dot_dimension_numbers<[1], [0], [0], [1], [0, 0, 1, 1], [], []>} : vector<16x128xbf16>, vector<128x128xbf16>, vector<16x128xf32> -> vector<16x128xf32>
    %c0_42 = arith.constant 0 : index
    %c0_43 = arith.constant 0 : index
    %46 = vector.load %arg7[%c0_42, %c0_43] : memref<1x128xf32, #tpu.memory_space<vmem>>, vector<1x128xf32>
    %47 = vector.broadcast %46 : vector<1x128xf32> to vector<16x128xf32>
    %48 = arith.addf %45, %47 : vector<16x128xf32>
    %c0_44 = arith.constant 0 : index
    %c0_45 = arith.constant 0 : index
    %49 = vector.load %arg8[%c0_44, %c0_45] : memref<16x128xf32, #tpu.memory_space<vmem>>, vector<16x128xf32>
    tpu.vector_store %arg8[%c0_44, %c0_45], %48 {strides = array<i32>} : memref<16x128xf32, #tpu.memory_space<vmem>>, vector<16x128xf32>,
    return
  }
  func.func @transform_0(%arg0: i32) -> (i32, i32) {
    %c0_i32 = arith.constant 0 : i32
    %c0_i32_0 = arith.constant 0 : i32
    return %arg0, %c0_i32 : i32, i32
  }
  func.func @transform_1(%arg0: i32) -> (i32, i32) {
    %c0_i32 = arith.constant 0 : i32
    %c0_i32_0 = arith.constant 0 : i32
    %c0_i32_1 = arith.constant 0 : i32
    return %c0_i32, %c0_i32_0 : i32, i32
  }
  func.func @transform_2(%arg0: i32) -> (i32, i32) {
    %c0_i32 = arith.constant 0 : i32
    %c0_i32_0 = arith.constant 0 : i32
    %c0_i32_1 = arith.constant 0 : i32
    return %c0_i32, %c0_i32_0 : i32, i32
  }
  func.func @transform_3(%arg0: i32) -> (i32, i32, i32) {
    %c0_i32 = arith.constant 0 : i32
    %c0_i32_0 = arith.constant 0 : i32
    %c0_i32_1 = arith.constant 0 : i32
    %c0_i32_2 = arith.constant 0 : i32
    return %c0_i32, %c0_i32_0, %c0_i32_1 : i32, i32, i32
  }
  func.func @transform_4(%arg0: i32) -> (i32, i32, i32) {
    %c0_i32 = arith.constant 0 : i32
    %c0_i32_0 = arith.constant 0 : i32
    %c0_i32_1 = arith.constant 0 : i32
    %c0_i32_2 = arith.constant 0 : i32
    return %c0_i32, %c0_i32_0, %c0_i32_1 : i32, i32, i32
  }
  func.func @transform_5(%arg0: i32) -> (i32, i32) {
    %c0_i32 = arith.constant 0 : i32
    %c0_i32_0 = arith.constant 0 : i32
    %c0_i32_1 = arith.constant 0 : i32
    return %c0_i32, %c0_i32_0 : i32, i32
  }
  func.func @transform_6(%arg0: i32) -> (i32, i32) {
    %c0_i32 = arith.constant 0 : i32
    %c0_i32_0 = arith.constant 0 : i32
    %c0_i32_1 = arith.constant 0 : i32
    return %c0_i32, %c0_i32_0 : i32, i32
  }
  func.func @transform_7(%arg0: i32) -> (i32, i32) {
    %c0_i32 = arith.constant 0 : i32
    %c0_i32_0 = arith.constant 0 : i32
    return %arg0, %c0_i32 : i32, i32
  }
}

module attributes {stable_mosaic.version = 11 : i64} {
  func.func @_resident_mlp_kernel(%arg0: i32, %arg1: memref<16x128xbf16, #tpu.memory_space<vmem>>, %arg2: memref<128x128xbf16, #tpu.memory_space<vmem>>, %arg3: memref<1x128xf32, #tpu.memory_space<vmem>>, %arg4: memref<2x128x128xbf16, #tpu.memory_space<vmem>>, %arg5: memref<2x1x128xf32, #tpu.memory_space<vmem>>, %arg6: memref<128x128xbf16, #tpu.memory_space<vmem>>, %arg7: memref<1x128xf32, #tpu.memory_space<vmem>>, %arg8: memref<16x128xf32, #tpu.memory_space<vmem>>, %arg9: memref<2x16x128xbf16, #tpu.memory_space<vmem>>) attributes {dimension_semantics = [#tpu.dimension_semantics<parallel>], iteration_bounds = array<i64: 1>, scalar_prefetch = 0 : i64, scratch_operands = 1 : i64, tpu.core_type = #tpu.core_type<tc>, window_params = [{transform_indices = @transform_0, window_bounds = array<i64: 16, 128>}, {pipeline_mode = #tpu.pipeline_mode<synchronous>, transform_indices = @transform_1, window_bounds = array<i64: 128, 128>}, {pipeline_mode = #tpu.pipeline_mode<synchronous>, transform_indices = @transform_2, window_bounds = array<i64: 1, 128>}, {pipeline_mode = #tpu.pipeline_mode<synchronous>, transform_indices = @transform_3, window_bounds = array<i64: 2, 128, 128>}, {pipeline_mode = #tpu.pipeline_mode<synchronous>, transform_indices = @transform_4, window_bounds = array<i64: 2, 1, 128>}, {pipeline_mode = #tpu.pipeline_mode<synchronous>, transform_indices = @transform_5, window_bounds = array<i64: 128, 128>}, {pipeline_mode = #tpu.pipeline_mode<synchronous>, transform_indices = @transform_6, window_bounds = array<i64: 1, 128>}, {transform_indices = @transform_7, window_bounds = array<i64: 16, 128>}]} {
    %c0 = arith.constant 0 : index
    %c0_0 = arith.constant 0 : index
    %0 = vector.load %arg1[%c0, %c0_0] : memref<16x128xbf16, #tpu.memory_space<vmem>>, vector<16x128xbf16>
    %c0_1 = arith.constant 0 : index
    %c0_2 = arith.constant 0 : index
    %1 = vector.load %arg2[%c0_1, %c0_2] : memref<128x128xbf16, #tpu.memory_space<vmem>>, vector<128x128xbf16>
    %cst = arith.constant dense<0.000000e+00> : vector<16x128xf32>
    %2 = tpu.matmul %0, %1, %cst {dimension_numbers = #tpu.dot_dimension_numbers<[1], [0], [0], [1], [0, 0, 1, 1], [], []>} : vector<16x128xbf16>, vector<128x128xbf16>, vector<16x128xf32> -> vector<16x128xf32>
    %c0_3 = arith.constant 0 : index
    %c0_4 = arith.constant 0 : index
    %3 = vector.load %arg3[%c0_3, %c0_4] : memref<1x128xf32, #tpu.memory_space<vmem>>, vector<1x128xf32>
    %4 = vector.broadcast %3 : vector<1x128xf32> to vector<16x128xf32>
    %5 = arith.addf %2, %4 : vector<16x128xf32>
    %cst_5 = arith.constant 0.000000e+00 : f32
    %6 = vector.broadcast %cst_5 : f32 to vector<16x128xf32>
    %7 = arith.maximumf %5, %6 : vector<16x128xf32>
    %8 = arith.truncf %7 : vector<16x128xf32> to vector<16x128xbf16>
    %c0_6 = arith.constant 0 : index
    %c0_7 = arith.constant 0 : index
    %c0_8 = arith.constant 0 : index
    %9 = vector.load %arg9[%c0_6, %c0_7, %c0_8] : memref<2x16x128xbf16, #tpu.memory_space<vmem>>, vector<1x16x128xbf16>
    %10 = vector.shape_cast %9 : vector<1x16x128xbf16> to vector<16x128xbf16>
    %11 = vector.shape_cast %8 : vector<16x128xbf16> to vector<1x16x128xbf16>
    tpu.vector_store %arg9[%c0_6, %c0_7, %c0_8], %11 {strides = array<i32>} : memref<2x16x128xbf16, #tpu.memory_space<vmem>>, vector<1x16x128xbf16>,
    %c0_9 = arith.constant 0 : index
    %c0_10 = arith.constant 0 : index
    %c0_11 = arith.constant 0 : index
    %12 = vector.load %arg9[%c0_9, %c0_10, %c0_11] : memref<2x16x128xbf16, #tpu.memory_space<vmem>>, vector<1x16x128xbf16>
    %13 = vector.shape_cast %12 : vector<1x16x128xbf16> to vector<16x128xbf16>
    %c0_12 = arith.constant 0 : index
    %c0_13 = arith.constant 0 : index
    %c0_14 = arith.constant 0 : index
    %14 = vector.load %arg4[%c0_12, %c0_13, %c0_14] : memref<2x128x128xbf16, #tpu.memory_space<vmem>>, vector<1x128x128xbf16>
    %15 = vector.shape_cast %14 : vector<1x128x128xbf16> to vector<128x128xbf16>
    %cst_15 = arith.constant dense<0.000000e+00> : vector<16x128xf32>
    %16 = tpu.matmul %13, %15, %cst_15 {dimension_numbers = #tpu.dot_dimension_numbers<[1], [0], [0], [1], [0, 0, 1, 1], [], []>} : vector<16x128xbf16>, vector<128x128xbf16>, vector<16x128xf32> -> vector<16x128xf32>
    %c0_16 = arith.constant 0 : index
    %c0_17 = arith.constant 0 : index
    %c0_18 = arith.constant 0 : index
    %17 = vector.load %arg5[%c0_16, %c0_17, %c0_18] : memref<2x1x128xf32, #tpu.memory_space<vmem>>, vector<1x1x128xf32>
    %18 = vector.shape_cast %17 : vector<1x1x128xf32> to vector<1x128xf32>
    %19 = vector.broadcast %18 : vector<1x128xf32> to vector<16x128xf32>
    %20 = arith.addf %16, %19 : vector<16x128xf32>
    %cst_19 = arith.constant 0.000000e+00 : f32
    %21 = vector.broadcast %cst_19 : f32 to vector<16x128xf32>
    %22 = arith.maximumf %20, %21 : vector<16x128xf32>
    %23 = arith.truncf %22 : vector<16x128xf32> to vector<16x128xbf16>
    %c1 = arith.constant 1 : index
    %c0_20 = arith.constant 0 : index
    %c0_21 = arith.constant 0 : index
    %24 = vector.load %arg9[%c1, %c0_20, %c0_21] : memref<2x16x128xbf16, #tpu.memory_space<vmem>>, vector<1x16x128xbf16>
    %25 = vector.shape_cast %24 : vector<1x16x128xbf16> to vector<16x128xbf16>
    %26 = vector.shape_cast %23 : vector<16x128xbf16> to vector<1x16x128xbf16>
    tpu.vector_store %arg9[%c1, %c0_20, %c0_21], %26 {strides = array<i32>} : memref<2x16x128xbf16, #tpu.memory_space<vmem>>, vector<1x16x128xbf16>,
    %c1_22 = arith.constant 1 : index
    %c0_23 = arith.constant 0 : index
    %c0_24 = arith.constant 0 : index
    %27 = vector.load %arg9[%c1_22, %c0_23, %c0_24] : memref<2x16x128xbf16, #tpu.memory_space<vmem>>, vector<1x16x128xbf16>
    %28 = vector.shape_cast %27 : vector<1x16x128xbf16> to vector<16x128xbf16>
    %c1_25 = arith.constant 1 : index
    %c0_26 = arith.constant 0 : index
    %c0_27 = arith.constant 0 : index
    %29 = vector.load %arg4[%c1_25, %c0_26, %c0_27] : memref<2x128x128xbf16, #tpu.memory_space<vmem>>, vector<1x128x128xbf16>
    %30 = vector.shape_cast %29 : vector<1x128x128xbf16> to vector<128x128xbf16>
    %cst_28 = arith.constant dense<0.000000e+00> : vector<16x128xf32>
    %31 = tpu.matmul %28, %30, %cst_28 {dimension_numbers = #tpu.dot_dimension_numbers<[1], [0], [0], [1], [0, 0, 1, 1], [], []>} : vector<16x128xbf16>, vector<128x128xbf16>, vector<16x128xf32> -> vector<16x128xf32>
    %c1_29 = arith.constant 1 : index
    %c0_30 = arith.constant 0 : index
    %c0_31 = arith.constant 0 : index
    %32 = vector.load %arg5[%c1_29, %c0_30, %c0_31] : memref<2x1x128xf32, #tpu.memory_space<vmem>>, vector<1x1x128xf32>
    %33 = vector.shape_cast %32 : vector<1x1x128xf32> to vector<1x128xf32>
    %34 = vector.broadcast %33 : vector<1x128xf32> to vector<16x128xf32>
    %35 = arith.addf %31, %34 : vector<16x128xf32>
    %cst_32 = arith.constant 0.000000e+00 : f32
    %36 = vector.broadcast %cst_32 : f32 to vector<16x128xf32>
    %37 = arith.maximumf %35, %36 : vector<16x128xf32>
    %38 = arith.truncf %37 : vector<16x128xf32> to vector<16x128xbf16>
    %c0_33 = arith.constant 0 : index
    %c0_34 = arith.constant 0 : index
    %c0_35 = arith.constant 0 : index
    %39 = vector.load %arg9[%c0_33, %c0_34, %c0_35] : memref<2x16x128xbf16, #tpu.memory_space<vmem>>, vector<1x16x128xbf16>
    %40 = vector.shape_cast %39 : vector<1x16x128xbf16> to vector<16x128xbf16>
    %41 = vector.shape_cast %38 : vector<16x128xbf16> to vector<1x16x128xbf16>
    tpu.vector_store %arg9[%c0_33, %c0_34, %c0_35], %41 {strides = array<i32>} : memref<2x16x128xbf16, #tpu.memory_space<vmem>>, vector<1x16x128xbf16>,
    %c0_36 = arith.constant 0 : index
    %c0_37 = arith.constant 0 : index
    %c0_38 = arith.constant 0 : index
    %42 = vector.load %arg9[%c0_36, %c0_37, %c0_38] : memref<2x16x128xbf16, #tpu.memory_space<vmem>>, vector<1x16x128xbf16>
    %43 = vector.shape_cast %42 : vector<1x16x128xbf16> to vector<16x128xbf16>
    %c0_39 = arith.constant 0 : index
    %c0_40 = arith.constant 0 : index
    %44 = vector.load %arg6[%c0_39, %c0_40] : memref<128x128xbf16, #tpu.memory_space<vmem>>, vector<128x128xbf16>
    %cst_41 = arith.constant dense<0.000000e+00> : vector<16x128xf32>
    %45 = tpu.matmul %43, %44, %cst_41 {dimension_numbers = #tpu.dot_dimension_numbers<[1], [0], [0], [1], [0, 0, 1, 1], [], []>} : vector<16x128xbf16>, vector<128x128xbf16>, vector<16x128xf32> -> vector<16x128xf32>
    %c0_42 = arith.constant 0 : index
    %c0_43 = arith.constant 0 : index
    %46 = vector.load %arg7[%c0_42, %c0_43] : memref<1x128xf32, #tpu.memory_space<vmem>>, vector<1x128xf32>
    %47 = vector.broadcast %46 : vector<1x128xf32> to vector<16x128xf32>
    %48 = arith.addf %45, %47 : vector<16x128xf32>
    %c0_44 = arith.constant 0 : index
    %c0_45 = arith.constant 0 : index
    %49 = vector.load %arg8[%c0_44, %c0_45] : memref<16x128xf32, #tpu.memory_space<vmem>>, vector<16x128xf32>
    tpu.vector_store %arg8[%c0_44, %c0_45], %48 {strides = array<i32>} : memref<16x128xf32, #tpu.memory_space<vmem>>, vector<16x128xf32>,
    return
  }
  func.func @transform_0(%arg0: i32) -> (i32, i32) {
    %c0_i32 = arith.constant 0 : i32
    %c0_i32_0 = arith.constant 0 : i32
    return %arg0, %c0_i32 : i32, i32
  }
  func.func @transform_1(%arg0: i32) -> (i32, i32) {
    %c0_i32 = arith.constant 0 : i32
    %c0_i32_0 = arith.constant 0 : i32
    %c0_i32_1 = arith.constant 0 : i32
    return %c0_i32, %c0_i32_0 : i32, i32
  }
  func.func @transform_2(%arg0: i32) -> (i32, i32) {
    %c0_i32 = arith.constant 0 : i32
    %c0_i32_0 = arith.constant 0 : i32
    %c0_i32_1 = arith.constant 0 : i32
    return %c0_i32, %c0_i32_0 : i32, i32
  }
  func.func @transform_3(%arg0: i32) -> (i32, i32, i32) {
    %c0_i32 = arith.constant 0 : i32
    %c0_i32_0 = arith.constant 0 : i32
    %c0_i32_1 = arith.constant 0 : i32
    %c0_i32_2 = arith.constant 0 : i32
    return %c0_i32, %c0_i32_0, %c0_i32_1 : i32, i32, i32
  }
  func.func @transform_4(%arg0: i32) -> (i32, i32, i32) {
    %c0_i32 = arith.constant 0 : i32
    %c0_i32_0 = arith.constant 0 : i32
    %c0_i32_1 = arith.constant 0 : i32
    %c0_i32_2 = arith.constant 0 : i32
    return %c0_i32, %c0_i32_0, %c0_i32_1 : i32, i32, i32
  }
  func.func @transform_5(%arg0: i32) -> (i32, i32) {
    %c0_i32 = arith.constant 0 : i32
    %c0_i32_0 = arith.constant 0 : i32
    %c0_i32_1 = arith.constant 0 : i32
    return %c0_i32, %c0_i32_0 : i32, i32
  }
  func.func @transform_6(%arg0: i32) -> (i32, i32) {
    %c0_i32 = arith.constant 0 : i32
    %c0_i32_0 = arith.constant 0 : i32
    %c0_i32_1 = arith.constant 0 : i32
    return %c0_i32, %c0_i32_0 : i32, i32
  }
  func.func @transform_7(%arg0: i32) -> (i32, i32) {
    %c0_i32 = arith.constant 0 : i32
    %c0_i32_0 = arith.constant 0 : i32
    return %arg0, %c0_i32 : i32, i32
  }
}

</mosaic_0001>

<bundles_post_ra>
// kernel: tpu_custom_call.1
= control target key start
LH: loop header
LB: loop body
LE: loop exit
PB: predicated region body
PF: predicated region fallthrough
CT: control target
= control target key end

     0   :  { %12 = vsyncpa [#allocation4], 0  ;;  %s907_s0 = inlined_call_operand.hbm [shape: bf16[16,128], index: 0, kind: input, shape index: {}]   ;;  %s908_s1 = inlined_call_operand.hbm [shape: bf16[128,128], index: 1, kind: input, shape index: {}]   ;;  %s909_s2 = inlined_call_operand.vmem [shape: f32[1,128], index: 2, kind: input, shape index: {}]   ;;  %s910_s3 = inlined_call_operand.hbm [shape: bf16[2,128,128], index: 3, kind: input, shape index: {}]   ;;  %s911_s4 = inlined_call_operand.vmem [shape: f32[2,1,128], index: 4, kind: input, shape index: {}]   ;;  %s912_s5 = inlined_call_operand.hbm [shape: bf16[128,128], index: 5, kind: input, shape index: {}]   ;;  %s913_s6 = inlined_call_operand.vmem [shape: f32[1,128], index: 6, kind: input, shape index: {}]   ;;  %s914_s7 = inlined_call_operand.hbm [shape: f32[16,128], index: 7, kind: output, shape index: {}]  }
   0x1   :  { %13 = vsyncpa [#allocation7], 0 }
   0x2   :  { %14 = vsyncpa [#allocation10], 0 }
   0x3   :  { %15 = vsyncpa [#allocation5], 0  ;;  %s33_s26 = sshll.u32 %s908_s1, 4  ;;  %s831_s27 = smov [#allocation6]   ;;  %s34_s26 = int_to_ptr.hbm [resolvable:$true] %s33_s26 }
   0x4   :  { %s35_s28 = sshll.u32 %s831_s27, 4  ;;  %s20_s8 = sshll.u32 %s907_s0, 4  ;;  %s36_s28 = int_to_ptr.vmem [resolvable:$true] %s35_s28  ;;  %s21_s8 = int_to_ptr.hbm [resolvable:$true] %s20_s8 }
   0x5   :  { %s832_s9 = smov 64   ;;  %s833_s10 = smov 4  }
   0x6   :  { %41 = dma.hbm_to_vmem [thread:$0]  %s34_s26, 1024, %s36_s28, [#allocation7], %s832_s9, %s832_s9, %s833_s10  }
   0x7   :  { %s834_s11 = smov [#allocation3]   ;;  %s48_s15 = sshll.u32 %s910_s3, 4  ;;  %s49_s15 = int_to_ptr.hbm [resolvable:$true] %s48_s15 }
   0x8   :  { %s22_s12 = sshll.u32 %s834_s11, 4  ;;  %s63_s17 = sshll.u32 %s912_s5, 4  ;;  %s23_s12 = int_to_ptr.vmem [resolvable:$true] %s22_s12  ;;  %s64_s17 = int_to_ptr.hbm [resolvable:$true] %s63_s17 }
   0x9   :  { %28 = dma.hbm_to_vmem [thread:$0]  %s21_s8, 128, %s23_s12, [#allocation4], %s832_s9, %s832_s9, %s833_s10  }
   0xa   :  { %s835_s18 = smov [#allocation8]   ;;  %s836_s0 = smov [#allocation9]  }
   0xb   :  { %s50_s19 = sshll.u32 %s835_s18, 4  ;;  %s65_s20 = sshll.u32 %s836_s0, 4  ;;  %s51_s19 = int_to_ptr.vmem [resolvable:$true] %s50_s19  ;;  %s66_s20 = int_to_ptr.vmem [resolvable:$true] %s65_s20 }
   0xc   :  { %56 = dma.hbm_to_vmem [thread:$0]  %s49_s15, 2048, %s51_s19, [#allocation7], %s832_s9, %s832_s9, %s833_s10  }
   0xd   :  { %71 = dma.hbm_to_vmem [thread:$0]  %s64_s17, 1024, %s66_s20, [#allocation10], %s832_s9, %s832_s9, %s833_s10  }
   0xe   :  { %823 = dma.done.wait [#allocation4], 128  }
   0xf   :  { %824 = vsyncadd [#allocation4], 4294967168 }
  0x10   :  { %825 = dma.done.wait [#allocation7], 3072  }
  0x11   :  { %826 = vsyncadd [#allocation7], 4294964224 }
  0x12   :  { %827 = dma.done.wait [#allocation10], 1024  }
  0x13   :  { %828 = vsyncadd [#allocation10], 4294966272  ;;  %v647_v0 = vld [vmem:[#allocation6 + $0x38] sm:$0xff]  ;;  %v646_v1 = vld [vmem:[#allocation6 + $0x30] sm:$0xff]  ;;  %s837_s26 = smov [#allocation11]   ;;  %s479_s29 = sshll.u32 %s914_s7, 4  ;;  %s480_s29 = int_to_ptr.hbm [resolvable:$true] %s479_s29 }
  0x14   :  { %166 = vmatpush.bf16.msra.mxu0 %v647_v0  ;;  %v656_v2 = vld [vmem:[#allocation8 + $0x38] sm:$0xff]  ;;  %v655_v3 = vld [vmem:[#allocation8 + $0x30] sm:$0xff]  ;;  %v645_v4 = vld [vmem:[#allocation6 + $0x28] sm:$0xff]  ;;  %s477_s27 = sshll.u32 %s837_s26, 4  ;;  %s838_s30 = smov 128   ;;  %s478_s27 = int_to_ptr.vmem [resolvable:$true] %s477_s27 }
  0x15   :  { %262 = vmatpush.bf16.msra.mxu1 %v656_v2  ;;  %v644_v5 = vld [vmem:[#allocation6 + $0x20] sm:$0xff]  ;;  %v643_v6 = vld [vmem:[#allocation6 + $0x18] sm:$0xff]  ;;  %v642_v7 = vld [vmem:[#allocation6 + $0x10] sm:$0xff]  ;;  %s839_s8 = smov 8  }
  0x16   :  { %v641_v8 = vld [vmem:[#allocation6 + $0x8] sm:$0xff]  ;;  %v640_v9 = vld [vmem:[#allocation6] sm:$0xff]  ;;  %v639_v10 = vld [vmem:[#allocation3] sm:$0xff] }
  0x17   :  { %v654_v11 = vld [vmem:[#allocation8 + $0x28] sm:$0xff]  ;;  %v653_v12 = vld [vmem:[#allocation8 + $0x20] sm:$0xff]  ;;  %v652_v13 = vld [vmem:[#allocation8 + $0x18] sm:$0xff] }
  0x18   :  { %167 = vmatpush.bf16.msra.mxu0 %v646_v1  ;;  %v651_v14 = vld [vmem:[#allocation8 + $0x10] sm:$0xff]  ;;  %v650_v15 = vld [vmem:[#allocation8 + $0x8] sm:$0xff]  ;;  %v649_v16 = vld [vmem:[#allocation8] sm:$0xff] }
  0x19   :  { %263 = vmatpush.bf16.msra.mxu1 %v655_v3  ;;  %v665_v17 = vld [vmem:[#allocation8 + $0x78] sm:$0xff]  ;;  %v664_v18 = vld [vmem:[#allocation8 + $0x70] sm:$0xff]  ;;  %v699_v20 = vld [vmem:[%s909_s2] ss:$0 sm:$0xff] }
  0x1a   :  { %361 = vmatpush.bf16.msra.mxu2 %v665_v17  ;;  %v663_v28 = vld [vmem:[#allocation8 + $0x68] sm:$0xff]  ;;  %v662_v29 = vld [vmem:[#allocation8 + $0x60] sm:$0xff]  ;;  %v661_v30 = vld [vmem:[#allocation8 + $0x58] sm:$0xff] }
  0x1b   :  { %v660_v31 = vld [vmem:[#allocation8 + $0x50] sm:$0xff]  ;;  %v659_v32 = vld [vmem:[#allocation8 + $0x48] sm:$0xff]  ;;  %v658_v33 = vld [vmem:[#allocation8 + $0x40] sm:$0xff] }
  0x1c   :  { %168 = vmatpush.bf16.msra.mxu0 %v645_v4  ;;  %v674_v34 = vld [vmem:[#allocation9 + $0x38] sm:$0xff]  ;;  %v673_v35 = vld [vmem:[#allocation9 + $0x30] sm:$0xff]  ;;  %v700_v37 = vld [vmem:[%s911_s4] ss:$0 sm:$0xff] }
  0x1d   :  { %264 = vmatpush.bf16.msra.mxu1 %v654_v11  ;;  %457 = vmatpush.bf16.msra.mxu3 %v674_v34  ;;  %v672_v45 = vld [vmem:[#allocation9 + $0x28] sm:$0xff]  ;;  %v671_v46 = vld [vmem:[#allocation9 + $0x20] sm:$0xff]  ;;  %v670_v47 = vld [vmem:[#allocation9 + $0x18] sm:$0xff] }
  0x1e   :  { %362 = vmatpush.bf16.msra.mxu2 %v664_v18  ;;  %v669_v48 = vld [vmem:[#allocation9 + $0x10] sm:$0xff]  ;;  %v668_v49 = vld [vmem:[#allocation9 + $0x8] sm:$0xff]  ;;  %v667_v50 = vld [vmem:[#allocation9] sm:$0xff] }
  0x1f   :  { %v701_v52 = vld [vmem:[%s911_s4 + $0x1] ss:$0 sm:$0xff]  ;;  %v702_v60 = vld [vmem:[%s913_s6] ss:$0 sm:$0xff] }
  0x20   :  { %169 = vmatpush.bf16.msra.mxu0 %v644_v5 }
  0x21   :  { %265 = vmatpush.bf16.msra.mxu1 %v653_v12  ;;  %458 = vmatpush.bf16.msra.mxu3 %v673_v35 }
  0x22   :  { %363 = vmatpush.bf16.msra.mxu2 %v663_v28 }
  0x24   :  { %170 = vmatpush.bf16.msra.mxu0 %v643_v6 }
  0x25   :  { %266 = vmatpush.bf16.msra.mxu1 %v652_v13  ;;  %459 = vmatpush.bf16.msra.mxu3 %v672_v45 }
  0x26   :  { %364 = vmatpush.bf16.msra.mxu2 %v662_v29 }
  0x28   :  { %171 = vmatpush.bf16.msra.mxu0 %v642_v7 }
  0x29   :  { %267 = vmatpush.bf16.msra.mxu1 %v651_v14  ;;  %460 = vmatpush.bf16.msra.mxu3 %v671_v46 }
  0x2a   :  { %365 = vmatpush.bf16.msra.mxu2 %v661_v30 }
  0x2c   :  { %172 = vmatpush.bf16.msra.mxu0 %v641_v8 }
  0x2d   :  { %268 = vmatpush.bf16.msra.mxu1 %v650_v15  ;;  %461 = vmatpush.bf16.msra.mxu3 %v670_v47 }
  0x2e   :  { %366 = vmatpush.bf16.msra.mxu2 %v660_v31 }
  0x30   :  { %173 = vmatpush.bf16.msra.mxu0 %v640_v9 }
  0x31   :  { %269 = vmatpush.bf16.msra.mxu1 %v649_v16  ;;  %462 = vmatpush.bf16.msra.mxu3 %v669_v48 }
  0x32   :  { %367 = vmatpush.bf16.msra.mxu2 %v659_v32 }
  0x33   :  { %174 = vmatmul.bf16.vlgmr.msra.gmra.mxu0 %v639_v10 }
  0x35   :  { %463 = vmatpush.bf16.msra.mxu3 %v668_v49 }
  0x36   :  { %368 = vmatpush.bf16.msra.mxu2 %v658_v33 }
  0x39   :  { %464 = vmatpush.bf16.msra.mxu3 %v667_v50 }
  0xb0   :  { %v175_v19 = vpop.f32.mrf.mxu0 }
  0xb1   :  { %v176_v21 = vadd.f32 %v699_v20, %v175_v19 }
  0xb3   :  { %v180_v24 = vmax.f32 %v176_v21, 0.0 }
  0xb8   :  { %v177_v22 = vpop.f32.mrf.mxu0 }
  0xb9   :  { %v178_v23 = vadd.f32 %v699_v20, %v177_v22 }
  0xbb   :  { %v181_v25 = vmax.f32 %v178_v23, 0.0 }
  0xbd   :  { %v678_v26 = vpack.c.bf16 %v181_v25, %v180_v24 }
  0xbf   :  { %679 = vst [vmem:[#allocation2] sm:$0xff] %v678_v26  }
  0xc6   :  { %v648_v27 = vld [vmem:[#allocation2] sm:$0xff] }
  0xc7   :  { %270 = vmatmul.bf16.vlgmr.msra.gmra.mxu1 %v648_v27 }
 0x144   :  { %v271_v36 = vpop.f32.mrf.mxu1 }
 0x145   :  { %v272_v38 = vadd.f32 %v700_v37, %v271_v36 }
 0x147   :  { %v276_v41 = vmax.f32 %v272_v38, 0.0 }
 0x14c   :  { %v273_v39 = vpop.f32.mrf.mxu1 }
 0x14d   :  { %v274_v40 = vadd.f32 %v700_v37, %v273_v39 }
 0x14f   :  { %v277_v42 = vmax.f32 %v274_v40, 0.0 }
 0x151   :  { %v683_v43 = vpack.c.bf16 %v277_v42, %v276_v41 }
 0x153   :  { %684 = vst [vmem:[#allocation2 + $0x8] sm:$0xff] %v683_v43  }
 0x15a   :  { %v657_v44 = vld [vmem:[#allocation2 + $0x8] sm:$0xff] }
 0x15b   :  { %369 = vmatmul.bf16.vlgmr.msra.gmra.mxu2 %v657_v44 }
 0x1de   :  { %v370_v51 = vpop.f32.mrf.mxu2 }
 0x1df   :  { %v371_v53 = vadd.f32 %v701_v52, %v370_v51 }
 0x1e1   :  { %v375_v56 = vmax.f32 %v371_v53, 0.0 }
 0x1e6   :  { %v372_v54 = vpop.f32.mrf.mxu2 }
 0x1e7   :  { %v373_v55 = vadd.f32 %v701_v52, %v372_v54 }
 0x1e9   :  { %v376_v57 = vmax.f32 %v373_v55, 0.0 }
 0x1eb   :  { %v688_v58 = vpack.c.bf16 %v376_v57, %v375_v56 }
 0x1ed   :  { %689 = vst [vmem:[#allocation2] sm:$0xff] %v688_v58  }
 0x1f4   :  { %v666_v59 = vld [vmem:[#allocation2] sm:$0xff] }
 0x1f5   :  { %465 = vmatmul.bf16.vlgmr.msra.gmra.mxu3 %v666_v59 }
 0x278   :  { %v466_v61 = vpop.f32.mrf.mxu3 }
 0x279   :  { %v467_v62 = vadd.f32 %v702_v60, %v466_v61 }
 0x27b   :  { %471 = vst [vmem:[#allocation11] sm:$0xff] %v467_v62 }
 0x280   :  { %v468_v63 = vpop.f32.mrf.mxu3 }
 0x281   :  { %v469_v0 = vadd.f32 %v702_v60, %v468_v63 }
 0x283   :  { %472 = vst [vmem:[#allocation11 + $0x8] sm:$0xff] %v469_v0 }
 0x284   :  { %485 = dma.vmem_to_hbm [thread:$0]  %s478_s27, 256, %s480_s29, [#allocation5], %s838_s30, %s838_s30, %s839_s8  }
 0x285   :  { %829 = dma.done.wait [#allocation5], 256  }
 0x286   :  { %830 = vsyncadd [#allocation5], 4294967040 }
 0x287   :  { %490 = vsyncpa [#allocation4], 1 }
 0x288   :  { %491 = vsyncpa [#allocation7], 1 }
 0x289   :  { %492 = vsyncpa [#allocation10], 1 }
 0x28a   :  { %493 = vsyncpa [#allocation5], 1 }

// kernel: tpu_custom_call.1
= control target key start
LH: loop header
LB: loop body
LE: loop exit
PB: predicated region body
PF: predicated region fallthrough
CT: control target
= control target key end

     0   :  { %12 = vsyncpa [#allocation4], 0  ;;  %s907_s0 = inlined_call_operand.hbm [shape: bf16[16,128], index: 0, kind: input, shape index: {}]   ;;  %s908_s1 = inlined_call_operand.hbm [shape: bf16[128,128], index: 1, kind: input, shape index: {}]   ;;  %s909_s2 = inlined_call_operand.vmem [shape: f32[1,128], index: 2, kind: input, shape index: {}]   ;;  %s910_s3 = inlined_call_operand.hbm [shape: bf16[2,128,128], index: 3, kind: input, shape index: {}]   ;;  %s911_s4 = inlined_call_operand.vmem [shape: f32[2,1,128], index: 4, kind: input, shape index: {}]   ;;  %s912_s5 = inlined_call_operand.hbm [shape: bf16[128,128], index: 5, kind: input, shape index: {}]   ;;  %s913_s6 = inlined_call_operand.vmem [shape: f32[1,128], index: 6, kind: input, shape index: {}]   ;;  %s914_s7 = inlined_call_operand.hbm [shape: f32[16,128], index: 7, kind: output, shape index: {}]  }
   0x1   :  { %13 = vsyncpa [#allocation7], 0 }
   0x2   :  { %14 = vsyncpa [#allocation10], 0 }
   0x3   :  { %15 = vsyncpa [#allocation5], 0  ;;  %s33_s26 = sshll.u32 %s908_s1, 4  ;;  %s831_s27 = smov [#allocation6]   ;;  %s34_s26 = int_to_ptr.hbm [resolvable:$true] %s33_s26 }
   0x4   :  { %s35_s28 = sshll.u32 %s831_s27, 4  ;;  %s20_s8 = sshll.u32 %s907_s0, 4  ;;  %s36_s28 = int_to_ptr.vmem [resolvable:$true] %s35_s28  ;;  %s21_s8 = int_to_ptr.hbm [resolvable:$true] %s20_s8 }
   0x5   :  { %s832_s9 = smov 64   ;;  %s833_s10 = smov 4  }
   0x6   :  { %41 = dma.hbm_to_vmem [thread:$0]  %s34_s26, 1024, %s36_s28, [#allocation7], %s832_s9, %s832_s9, %s833_s10  }
   0x7   :  { %s834_s11 = smov [#allocation3]   ;;  %s48_s15 = sshll.u32 %s910_s3, 4  ;;  %s49_s15 = int_to_ptr.hbm [resolvable:$true] %s48_s15 }
   0x8   :  { %s22_s12 = sshll.u32 %s834_s11, 4  ;;  %s63_s17 = sshll.u32 %s912_s5, 4  ;;  %s23_s12 = int_to_ptr.vmem [resolvable:$true] %s22_s12  ;;  %s64_s17 = int_to_ptr.hbm [resolvable:$true] %s63_s17 }
   0x9   :  { %28 = dma.hbm_to_vmem [thread:$0]  %s21_s8, 128, %s23_s12, [#allocation4], %s832_s9, %s832_s9, %s833_s10  }
   0xa   :  { %s835_s18 = smov [#allocation8]   ;;  %s836_s0 = smov [#allocation9]  }
   0xb   :  { %s50_s19 = sshll.u32 %s835_s18, 4  ;;  %s65_s20 = sshll.u32 %s836_s0, 4  ;;  %s51_s19 = int_to_ptr.vmem [resolvable:$true] %s50_s19  ;;  %s66_s20 = int_to_ptr.vmem [resolvable:$true] %s65_s20 }
   0xc   :  { %56 = dma.hbm_to_vmem [thread:$0]  %s49_s15, 2048, %s51_s19, [#allocation7], %s832_s9, %s832_s9, %s833_s10  }
   0xd   :  { %71 = dma.hbm_to_vmem [thread:$0]  %s64_s17, 1024, %s66_s20, [#allocation10], %s832_s9, %s832_s9, %s833_s10  }
   0xe   :  { %823 = dma.done.wait [#allocation4], 128  }
   0xf   :  { %824 = vsyncadd [#allocation4], 4294967168 }
  0x10   :  { %825 = dma.done.wait [#allocation7], 3072  }
  0x11   :  { %826 = vsyncadd [#allocation7], 4294964224 }
  0x12   :  { %827 = dma.done.wait [#allocation10], 1024  }
  0x13   :  { %828 = vsyncadd [#allocation10], 4294966272  ;;  %v647_v0 = vld [vmem:[#allocation6 + $0x38] sm:$0xff]  ;;  %v646_v1 = vld [vmem:[#allocation6 + $0x30] sm:$0xff]  ;;  %s837_s26 = smov [#allocation11]   ;;  %s479_s29 = sshll.u32 %s914_s7, 4  ;;  %s480_s29 = int_to_ptr.hbm [resolvable:$true] %s479_s29 }
  0x14   :  { %166 = vmatpush.bf16.msra.mxu0 %v647_v0  ;;  %v656_v2 = vld [vmem:[#allocation8 + $0x38] sm:$0xff]  ;;  %v655_v3 = vld [vmem:[#allocation8 + $0x30] sm:$0xff]  ;;  %v645_v4 = vld [vmem:[#allocation6 + $0x28] sm:$0xff]  ;;  %s477_s27 = sshll.u32 %s837_s26, 4  ;;  %s838_s30 = smov 128   ;;  %s478_s27 = int_to_ptr.vmem [resolvable:$true] %s477_s27 }
  0x15   :  { %262 = vmatpush.bf16.msra.mxu1 %v656_v2  ;;  %v644_v5 = vld [vmem:[#allocation6 + $0x20] sm:$0xff]  ;;  %v643_v6 = vld [vmem:[#allocation6 + $0x18] sm:$0xff]  ;;  %v642_v7 = vld [vmem:[#allocation6 + $0x10] sm:$0xff]  ;;  %s839_s8 = smov 8  }
  0x16   :  { %v641_v8 = vld [vmem:[#allocation6 + $0x8] sm:$0xff]  ;;  %v640_v9 = vld [vmem:[#allocation6] sm:$0xff]  ;;  %v639_v10 = vld [vmem:[#allocation3] sm:$0xff] }
  0x17   :  { %v654_v11 = vld [vmem:[#allocation8 + $0x28] sm:$0xff]  ;;  %v653_v12 = vld [vmem:[#allocation8 + $0x20] sm:$0xff]  ;;  %v652_v13 = vld [vmem:[#allocation8 + $0x18] sm:$0xff] }
  0x18   :  { %167 = vmatpush.bf16.msra.mxu0 %v646_v1  ;;  %v651_v14 = vld [vmem:[#allocation8 + $0x10] sm:$0xff]  ;;  %v650_v15 = vld [vmem:[#allocation8 + $0x8] sm:$0xff]  ;;  %v649_v16 = vld [vmem:[#allocation8] sm:$0xff] }
  0x19   :  { %263 = vmatpush.bf16.msra.mxu1 %v655_v3  ;;  %v665_v17 = vld [vmem:[#allocation8 + $0x78] sm:$0xff]  ;;  %v664_v18 = vld [vmem:[#allocation8 + $0x70] sm:$0xff]  ;;  %v699_v20 = vld [vmem:[%s909_s2] ss:$0 sm:$0xff] }
  0x1a   :  { %361 = vmatpush.bf16.msra.mxu2 %v665_v17  ;;  %v663_v28 = vld [vmem:[#allocation8 + $0x68] sm:$0xff]  ;;  %v662_v29 = vld [vmem:[#allocation8 + $0x60] sm:$0xff]  ;;  %v661_v30 = vld [vmem:[#allocation8 + $0x58] sm:$0xff] }
  0x1b   :  { %v660_v31 = vld [vmem:[#allocation8 + $0x50] sm:$0xff]  ;;  %v659_v32 = vld [vmem:[#allocation8 + $0x48] sm:$0xff]  ;;  %v658_v33 = vld [vmem:[#allocation8 + $0x40] sm:$0xff] }
  0x1c   :  { %168 = vmatpush.bf16.msra.mxu0 %v645_v4  ;;  %v674_v34 = vld [vmem:[#allocation9 + $0x38] sm:$0xff]  ;;  %v673_v35 = vld [vmem:[#allocation9 + $0x30] sm:$0xff]  ;;  %v700_v37 = vld [vmem:[%s911_s4] ss:$0 sm:$0xff] }
  0x1d   :  { %264 = vmatpush.bf16.msra.mxu1 %v654_v11  ;;  %457 = vmatpush.bf16.msra.mxu3 %v674_v34  ;;  %v672_v45 = vld [vmem:[#allocation9 + $0x28] sm:$0xff]  ;;  %v671_v46 = vld [vmem:[#allocation9 + $0x20] sm:$0xff]  ;;  %v670_v47 = vld [vmem:[#allocation9 + $0x18] sm:$0xff] }
  0x1e   :  { %362 = vmatpush.bf16.msra.mxu2 %v664_v18  ;;  %v669_v48 = vld [vmem:[#allocation9 + $0x10] sm:$0xff]  ;;  %v668_v49 = vld [vmem:[#allocation9 + $0x8] sm:$0xff]  ;;  %v667_v50 = vld [vmem:[#allocation9] sm:$0xff] }
  0x1f   :  { %v701_v52 = vld [vmem:[%s911_s4 + $0x1] ss:$0 sm:$0xff]  ;;  %v702_v60 = vld [vmem:[%s913_s6] ss:$0 sm:$0xff] }
  0x20   :  { %169 = vmatpush.bf16.msra.mxu0 %v644_v5 }
  0x21   :  { %265 = vmatpush.bf16.msra.mxu1 %v653_v12  ;;  %458 = vmatpush.bf16.msra.mxu3 %v673_v35 }
  0x22   :  { %363 = vmatpush.bf16.msra.mxu2 %v663_v28 }
  0x24   :  { %170 = vmatpush.bf16.msra.mxu0 %v643_v6 }
  0x25   :  { %266 = vmatpush.bf16.msra.mxu1 %v652_v13  ;;  %459 = vmatpush.bf16.msra.mxu3 %v672_v45 }
  0x26   :  { %364 = vmatpush.bf16.msra.mxu2 %v662_v29 }
  0x28   :  { %171 = vmatpush.bf16.msra.mxu0 %v642_v7 }
  0x29   :  { %267 = vmatpush.bf16.msra.mxu1 %v651_v14  ;;  %460 = vmatpush.bf16.msra.mxu3 %v671_v46 }
  0x2a   :  { %365 = vmatpush.bf16.msra.mxu2 %v661_v30 }
  0x2c   :  { %172 = vmatpush.bf16.msra.mxu0 %v641_v8 }
  0x2d   :  { %268 = vmatpush.bf16.msra.mxu1 %v650_v15  ;;  %461 = vmatpush.bf16.msra.mxu3 %v670_v47 }
  0x2e   :  { %366 = vmatpush.bf16.msra.mxu2 %v660_v31 }
  0x30   :  { %173 = vmatpush.bf16.msra.mxu0 %v640_v9 }
  0x31   :  { %269 = vmatpush.bf16.msra.mxu1 %v649_v16  ;;  %462 = vmatpush.bf16.msra.mxu3 %v669_v48 }
  0x32   :  { %367 = vmatpush.bf16.msra.mxu2 %v659_v32 }
  0x33   :  { %174 = vmatmul.bf16.vlgmr.msra.gmra.mxu0 %v639_v10 }
  0x35   :  { %463 = vmatpush.bf16.msra.mxu3 %v668_v49 }
  0x36   :  { %368 = vmatpush.bf16.msra.mxu2 %v658_v33 }
  0x39   :  { %464 = vmatpush.bf16.msra.mxu3 %v667_v50 }
  0xb0   :  { %v175_v19 = vpop.f32.mrf.mxu0 }
  0xb1   :  { %v176_v21 = vadd.f32 %v699_v20, %v175_v19 }
  0xb3   :  { %v180_v24 = vmax.f32 %v176_v21, 0.0 }
  0xb8   :  { %v177_v22 = vpop.f32.mrf.mxu0 }
  0xb9   :  { %v178_v23 = vadd.f32 %v699_v20, %v177_v22 }
  0xbb   :  { %v181_v25 = vmax.f32 %v178_v23, 0.0 }
  0xbd   :  { %v678_v26 = vpack.c.bf16 %v181_v25, %v180_v24 }
  0xbf   :  { %679 = vst [vmem:[#allocation2] sm:$0xff] %v678_v26  }
  0xc6   :  { %v648_v27 = vld [vmem:[#allocation2] sm:$0xff] }
  0xc7   :  { %270 = vmatmul.bf16.vlgmr.msra.gmra.mxu1 %v648_v27 }
 0x144   :  { %v271_v36 = vpop.f32.mrf.mxu1 }
 0x145   :  { %v272_v38 = vadd.f32 %v700_v37, %v271_v36 }
 0x147   :  { %v276_v41 = vmax.f32 %v272_v38, 0.0 }
 0x14c   :  { %v273_v39 = vpop.f32.mrf.mxu1 }
 0x14d   :  { %v274_v40 = vadd.f32 %v700_v37, %v273_v39 }
 0x14f   :  { %v277_v42 = vmax.f32 %v274_v40, 0.0 }
 0x151   :  { %v683_v43 = vpack.c.bf16 %v277_v42, %v276_v41 }
 0x153   :  { %684 = vst [vmem:[#allocation2 + $0x8] sm:$0xff] %v683_v43  }
 0x15a   :  { %v657_v44 = vld [vmem:[#allocation2 + $0x8] sm:$0xff] }
 0x15b   :  { %369 = vmatmul.bf16.vlgmr.msra.gmra.mxu2 %v657_v44 }
 0x1de   :  { %v370_v51 = vpop.f32.mrf.mxu2 }
 0x1df   :  { %v371_v53 = vadd.f32 %v701_v52, %v370_v51 }
 0x1e1   :  { %v375_v56 = vmax.f32 %v371_v53, 0.0 }
 0x1e6   :  { %v372_v54 = vpop.f32.mrf.mxu2 }
 0x1e7   :  { %v373_v55 = vadd.f32 %v701_v52, %v372_v54 }
 0x1e9   :  { %v376_v57 = vmax.f32 %v373_v55, 0.0 }
 0x1eb   :  { %v688_v58 = vpack.c.bf16 %v376_v57, %v375_v56 }
 0x1ed   :  { %689 = vst [vmem:[#allocation2] sm:$0xff] %v688_v58  }
 0x1f4   :  { %v666_v59 = vld [vmem:[#allocation2] sm:$0xff] }
 0x1f5   :  { %465 = vmatmul.bf16.vlgmr.msra.gmra.mxu3 %v666_v59 }
 0x278   :  { %v466_v61 = vpop.f32.mrf.mxu3 }
 0x279   :  { %v467_v62 = vadd.f32 %v702_v60, %v466_v61 }
 0x27b   :  { %471 = vst [vmem:[#allocation11] sm:$0xff] %v467_v62 }
 0x280   :  { %v468_v63 = vpop.f32.mrf.mxu3 }
 0x281   :  { %v469_v0 = vadd.f32 %v702_v60, %v468_v63 }
 0x283   :  { %472 = vst [vmem:[#allocation11 + $0x8] sm:$0xff] %v469_v0 }
 0x284   :  { %485 = dma.vmem_to_hbm [thread:$0]  %s478_s27, 256, %s480_s29, [#allocation5], %s838_s30, %s838_s30, %s839_s8  }
 0x285   :  { %829 = dma.done.wait [#allocation5], 256  }
 0x286   :  { %830 = vsyncadd [#allocation5], 4294967040 }
 0x287   :  { %490 = vsyncpa [#allocation4], 1 }
 0x288   :  { %491 = vsyncpa [#allocation7], 1 }
 0x289   :  { %492 = vsyncpa [#allocation10], 1 }
 0x28a   :  { %493 = vsyncpa [#allocation5], 1 }

</bundles_post_ra>
